<compile_context>
chip_gen: v6e
topology: v6e:2x2x1
jax: 0.10.0
libtpu: 0.0.40
codegen_flags: <defaults>
</compile_context>

<pallas_src>
import functools

import jax
import jax.numpy as jnp
from jax.experimental import pallas as pl
from jax.experimental.pallas import tpu as pltpu

_LANE = 128
_MXU_K = 256                               # v6e/v7x MXU is 2x256^2 -> K granule
_DEFAULT_VMEM_BUDGET = 40 * 1024 * 1024    # working-set target; safe on 64 MiB/TC v7x
_MAX_VMEM_LIMIT = 56 * 1024 * 1024         # never request more than this scoped VMEM


def _round_up(n, m):
    return ((n + m - 1) // m) * m


def _cdiv(a, b):
    return (a + b - 1) // b


# --------------------------------------------------------------------------
# Kernel bodies
# --------------------------------------------------------------------------
def _linear_relu_kernel(x_ref, w_ref, b_ref, out_ref, *, mm_dtype):
    """One batch tile, whole K resident: out = relu(x @ w + b)."""
    x = x_ref[...].astype(mm_dtype)          # in-kernel cast (VPU), no extra HBM pass
    acc = jnp.dot(x, w_ref[...], preferred_element_type=jnp.float32)
    out_ref[...] = jnp.maximum(acc + b_ref[...], 0.0).astype(out_ref.dtype)


def _linear_relu_ksplit_kernel(x_ref, w_ref, b_ref, out_ref, acc_ref, *, mm_dtype):
    """K split across an inner 'arbitrary' grid axis with an f32 accumulator."""
    k = pl.program_id(1)

    @pl.when(k == 0)
    def _():
        acc_ref[...] = jnp.zeros_like(acc_ref)

    x = x_ref[...].astype(mm_dtype)
    acc_ref[...] += jnp.dot(x, w_ref[...], preferred_element_type=jnp.float32)

    @pl.when(k == pl.num_programs(1) - 1)
    def _():
        out_ref[...] = jnp.maximum(acc_ref[...] + b_ref[...], 0.0).astype(out_ref.dtype)


# --------------------------------------------------------------------------
# Tiling helpers
# --------------------------------------------------------------------------
def _choose_batch_tile(batch, block_b, sublane):
    """Balanced batch tile: avoids the old round_up(B, tb) blowup."""
    n_tiles = max(1, _cdiv(batch, block_b))
    # v7x has 2 TensorCores/chip; a 1-step grid leaves one idle. Splitting is
    # essentially free on single-TC v5e/v6e (one extra ~0.35us grid step).
    if n_tiles == 1 and batch >= 2 * sublane:
        n_tiles = 2
    return _round_up(_cdiv(batch, n_tiles), sublane)


def _vmem_estimate(tb, k_blk, d_enc, x_bytes, w_bytes, out_bytes, ksplit):
    """Rough VMEM working set (double-buffered pipeline), lane-padded."""
    lane_enc = max(d_enc, _LANE)
    lane_k = max(k_blk, _LANE)
    est = 2 * tb * lane_k * x_bytes            # x tile (2 buffers)
    est += 2 * lane_k * lane_enc * w_bytes     # weight tile (assume 2 buffers)
    est += 2 * tb * lane_enc * out_bytes       # out tile (2 buffers)
    est += 2 * 8 * lane_enc * 4                # bias (sublane padded)
    if ksplit:
        est += tb * lane_enc * 4               # f32 accumulator scratch
    return est


# --------------------------------------------------------------------------
# Public API
# --------------------------------------------------------------------------
def prepare_decoder_params(w_dec, b_dec, matmul_dtype=jnp.bfloat16):
    """One-time weight cast + bias reshape (hoisted out of the per-call path).

    w_dec is expected in [D_in, D_enc] matmul layout (PyTorch stores Linear
    weights as [D_enc, D_in]; transpose once at conversion time).
    """
    w = jnp.asarray(w_dec, jnp.dtype(matmul_dtype))
    b = jnp.asarray(b_dec, jnp.float32).reshape(1, -1)
    return w, b


def autoencoder_forward(x, w_enc, b_enc, w_dec, b_dec, *,
                        block_b=1024, block_k=None,
                        matmul_dtype=jnp.bfloat16, out_dtype=None,
                        vmem_budget_bytes=_DEFAULT_VMEM_BUDGET):
    """Forward pass of the PyTorch Autoencoder (returns the decoder branch).

    Args:
      x:      [..., D_in] input.
      w_enc:  encoder weight  (forward discards `encoded` -> dropped, no DMA).
      b_enc:  encoder bias    (dropped).
      w_dec:  [D_in, D_enc] decoder weight (matmul layout), any float dtype.
      b_dec:  [D_enc] (or [1, D_enc]) decoder bias.
      block_b: max batch rows per grid step.
      block_k: optional K (D_in) tile; if the resident weight would not fit the
        VMEM budget a K-reduction grid axis is engaged automatically.
      matmul_dtype: dtype fed to the MXU (default bf16 on all generations);
        accumulation and the bias/ReLU epilogue are always f32.
      out_dtype: output dtype (default: x.dtype).
      vmem_budget_bytes: working-set target (default fits v7x's 64 MiB/TC).
    """
    # Dead encoder branch: the PyTorch forward returns decoder(x) only.
    del w_enc, b_enc

    lead_shape = None
    if x.ndim != 2:
        lead_shape = x.shape[:-1]
        x = x.reshape(-1, x.shape[-1])

    B, D_in = x.shape
    d_in_w, D_enc = w_dec.shape
    assert d_in_w == D_in, "w_dec must be [D_in, D_enc]"

    out_dtype = jnp.dtype(out_dtype if out_dtype is not None else x.dtype)
    mm_dtype = jnp.dtype(matmul_dtype if matmul_dtype is not None else x.dtype)

    x_bytes = jnp.dtype(x.dtype).itemsize
    w_bytes = mm_dtype.itemsize
    o_bytes = out_dtype.itemsize

    # bf16 packs [16,128] per vreg -> keep bf16 tiles 16-row aligned.
    bf16 = jnp.dtype(jnp.bfloat16)
    sublane = 16 if bf16 in (mm_dtype, out_dtype, jnp.dtype(x.dtype)) else 8

    # ---- batch tiling (balanced, no blowup) --------------------------------
    tb = _choose_batch_tile(B, block_b, sublane)

    # ---- K tiling: split only when the resident weight would blow VMEM -----
    if block_k is None:
        if _vmem_estimate(sublane, D_in, D_enc, x_bytes, w_bytes, o_bytes,
                          False) <= vmem_budget_bytes:
            block_k = D_in
        else:
            per_k_row = 2 * max(D_enc, _LANE) * w_bytes
            k_rows = (vmem_budget_bytes // 2) // max(per_k_row, 1)
            block_k = max(_MXU_K, (k_rows // _MXU_K) * _MXU_K)
    else:
        block_k = _round_up(min(block_k, D_in), _LANE)
    ksplit = block_k < D_in
    d_in_pad = _round_up(D_in, block_k) if ksplit else D_in
    k_blk = block_k if ksplit else d_in_pad
    num_k = d_in_pad // k_blk

    # ---- shrink the batch tile to fit the VMEM budget -----------------------
    while _vmem_estimate(tb, k_blk, D_enc, x_bytes, w_bytes, o_bytes,
                         ksplit) > vmem_budget_bytes:
        tb_new = max(sublane, (tb // 2) // sublane * sublane)
        if tb_new == tb:
            break
        tb = tb_new

    b_pad = _round_up(B, tb)
    num_b = b_pad // tb

    # ---- gated input preparation (no copies when nothing needs padding) -----
    pad_rows = b_pad - B
    pad_k = d_in_pad - D_in
    x_in = jnp.pad(x, ((0, pad_rows), (0, pad_k))) if (pad_rows or pad_k) else x

    w_in = w_dec if jnp.dtype(w_dec.dtype) == mm_dtype else w_dec.astype(mm_dtype)
    if pad_k:
        w_in = jnp.pad(w_in, ((0, pad_k), (0, 0)))
    b_in = b_dec if b_dec.ndim == 2 else b_dec.reshape(1, -1)
    if jnp.dtype(b_in.dtype) != jnp.dtype(jnp.float32):
        b_in = b_in.astype(jnp.float32)

    # ---- pallas_call --------------------------------------------------------
    est = _vmem_estimate(tb, k_blk, D_enc, x_bytes, w_bytes, o_bytes, ksplit)
    vmem_limit = int(min(_MAX_VMEM_LIMIT, max(32 * 1024 * 1024, est + (8 << 20))))
    cost = pl.CostEstimate(
        flops=2 * b_pad * d_in_pad * D_enc,
        bytes_accessed=(x_in.size * x_bytes + w_in.size * w_bytes
                        + b_in.size * 4 + b_pad * D_enc * o_bytes),
        transcendentals=0)

    if not ksplit:
        kernel = functools.partial(_linear_relu_kernel, mm_dtype=mm_dtype)
        grid = (num_b,)
        in_specs = [
            # x: one batch tile per grid step (double-buffered pipeline).
            pl.BlockSpec((tb, d_in_pad), lambda i: (i, 0)),
            # weight & bias: constant block index -> fetched once, VMEM-resident.
            pl.BlockSpec((d_in_pad, D_enc), lambda i: (0, 0)),
            pl.BlockSpec((1, D_enc), lambda i: (0, 0)),
        ]
        out_specs = pl.BlockSpec((tb, D_enc), lambda i: (i, 0))
        scratch = []
        dims = ("parallel",)
    else:
        kernel = functools.partial(_linear_relu_ksplit_kernel, mm_dtype=mm_dtype)
        grid = (num_b, num_k)
        in_specs = [
            pl.BlockSpec((tb, k_blk), lambda i, k: (i, k)),
            pl.BlockSpec((k_blk, D_enc), lambda i, k: (k, 0)),
            pl.BlockSpec((1, D_enc), lambda i, k: (0, 0)),
        ]
        out_specs = pl.BlockSpec((tb, D_enc), lambda i, k: (i, 0))
        scratch = [pltpu.VMEM((tb, D_enc), jnp.float32)]
        dims = ("parallel", "arbitrary")

    out_p = pl.pallas_call(
        kernel,
        out_shape=jax.ShapeDtypeStruct((b_pad, D_enc), out_dtype),
        grid=grid,
        in_specs=in_specs,
        out_specs=out_specs,
        scratch_shapes=scratch,
        compiler_params=pltpu.CompilerParams(
            dimension_semantics=dims,
            vmem_limit_bytes=vmem_limit,
        ),
        cost_estimate=cost,
    )(x_in, w_in, b_in)

    out = out_p if pad_rows == 0 else out_p[:B]
    if lead_shape is not None:
        out = out.reshape(*lead_shape, D_enc)
    return out


def init_params(key, input_dim, encoding_dim):
    """PyTorch-Linear-style init (uniform +/- 1/sqrt(fan_in)).

    Weights are stored directly in [D_in, D_enc] matmul layout so the wrapper
    never materializes a transpose.
    """
    k1, k2, k3, k4 = jax.random.split(key, 4)
    bound = 1.0 / jnp.sqrt(jnp.float32(input_dim))
    w_enc = jax.random.uniform(k1, (input_dim, encoding_dim), jnp.float32,
                               -bound, bound)
    b_enc = jax.random.uniform(k2, (encoding_dim,), jnp.float32, -bound, bound)
    w_dec = jax.random.uniform(k3, (input_dim, encoding_dim), jnp.float32,
                               -bound, bound)
    b_dec = jax.random.uniform(k4, (encoding_dim,), jnp.float32, -bound, bound)
    return w_enc, b_enc, w_dec, b_dec


if __name__ == "__main__":
    key = jax.random.PRNGKey(0)
    k_x, k_p, k_x2, k_p2 = jax.random.split(key, 4)

    batch, input_dim, encoding_dim = 8, 32, 16
    x = jax.random.normal(k_x, (batch, input_dim), jnp.float32)
    w_enc, b_enc, w_dec, b_dec = init_params(k_p, input_dim, encoding_dim)
    ref_f32 = jnp.maximum(x @ w_dec + b_dec, 0.0)

    # --- 1) f32 MXU inputs: tight check against the f32 reference -----------
    out_f32 = jax.block_until_ready(
        autoencoder_forward(x, w_enc, b_enc, w_dec, b_dec,
                            matmul_dtype=jnp.float32))
    assert out_f32.shape == (batch, encoding_dim)
    assert jnp.allclose(out_f32, ref_f32, atol=1e-5, rtol=1e-5)

    # --- 2) default config: bf16 MXU inputs, f32 accumulate/epilogue --------
    #        (weights pre-cast once via prepare_decoder_params)
    w_prep, b_prep = prepare_decoder_params(w_dec, b_dec)
    out_bf16 = jax.block_until_ready(
        autoencoder_forward(x, w_enc, b_enc, w_prep, b_prep))
    ref_bf16 = jnp.maximum(
        jnp.dot(x.astype(jnp.bfloat16), w_dec.astype(jnp.bfloat16),
                preferred_element_type=jnp.float32) + b_dec, 0.0)
    assert out_bf16.shape == (batch, encoding_dim)
    assert jnp.allclose(out_bf16, ref_bf16, atol=1e-4, rtol=1e-4)
    assert jnp.allclose(out_bf16, ref_f32, atol=5e-2, rtol=5e-2)

    # --- 3) K-split path: reduction grid axis + f32 accumulator scratch -----
    big_batch, big_in = 24, 256
    x2 = jax.random.normal(k_x2, (big_batch, big_in), jnp.float32)
    _, _, w_dec2, b_dec2 = init_params(k_p2, big_in, encoding_dim)
    out_ks = jax.block_until_ready(
        autoencoder_forward(x2, None, None, w_dec2, b_dec2,
                            matmul_dtype=jnp.float32, block_k=128))
    ref_ks = jnp.maximum(x2 @ w_dec2 + b_dec2, 0.0)
    assert out_ks.shape == (big_batch, encoding_dim)
    assert jnp.allclose(out_ks, ref_ks, atol=1e-4, rtol=1e-4)

    print("KERNEL_OK")
</pallas_src>

<mosaic_0001>
module attributes {stable_mosaic.version = 11 : i64} {
  func.func @_linear_relu_kernel(%arg0: i32, %arg1: memref<8x32xf32, #tpu.memory_space<vmem>>, %arg2: memref<32x16xf32, #tpu.memory_space<vmem>>, %arg3: memref<1x16xf32, #tpu.memory_space<vmem>>, %arg4: memref<8x16xf32, #tpu.memory_space<vmem>>) attributes {dimension_semantics = [#tpu.dimension_semantics<parallel>], iteration_bounds = array<i64: 1>, scalar_prefetch = 0 : i64, scratch_operands = 0 : i64, tpu.core_type = #tpu.core_type<tc>, window_params = [{transform_indices = @transform_0, window_bounds = array<i64: 8, 32>}, {pipeline_mode = #tpu.pipeline_mode<synchronous>, transform_indices = @transform_1, window_bounds = array<i64: 32, 16>}, {pipeline_mode = #tpu.pipeline_mode<synchronous>, transform_indices = @transform_2, window_bounds = array<i64: 1, 16>}, {transform_indices = @transform_3, window_bounds = array<i64: 8, 16>}]} {
    %c0 = arith.constant 0 : index
    %c0_0 = arith.constant 0 : index
    %0 = vector.load %arg1[%c0, %c0_0] : memref<8x32xf32, #tpu.memory_space<vmem>>, vector<8x32xf32>
    %c0_1 = arith.constant 0 : index
    %c0_2 = arith.constant 0 : index
    %1 = vector.load %arg2[%c0_1, %c0_2] : memref<32x16xf32, #tpu.memory_space<vmem>>, vector<32x16xf32>
    %cst = arith.constant dense<0.000000e+00> : vector<8x16xf32>
    %2 = tpu.matmul %0, %1, %cst {dimension_numbers = #tpu.dot_dimension_numbers<[1], [0], [0], [1], [0, 0, 1, 1], [], []>} : vector<8x32xf32>, vector<32x16xf32>, vector<8x16xf32> -> vector<8x16xf32>
    %c0_3 = arith.constant 0 : index
    %c0_4 = arith.constant 0 : index
    %3 = vector.load %arg3[%c0_3, %c0_4] : memref<1x16xf32, #tpu.memory_space<vmem>>, vector<1x16xf32>
    %4 = vector.broadcast %3 : vector<1x16xf32> to vector<8x16xf32>
    %5 = arith.addf %2, %4 : vector<8x16xf32>
    %cst_5 = arith.constant 0.000000e+00 : f32
    %6 = vector.broadcast %cst_5 : f32 to vector<8x16xf32>
    %7 = arith.maximumf %5, %6 : vector<8x16xf32>
    %c0_6 = arith.constant 0 : index
    %c0_7 = arith.constant 0 : index
    %8 = vector.load %arg4[%c0_6, %c0_7] : memref<8x16xf32, #tpu.memory_space<vmem>>, vector<8x16xf32>
    tpu.vector_store %arg4[%c0_6, %c0_7], %7 {strides = array<i32>} : memref<8x16xf32, #tpu.memory_space<vmem>>, vector<8x16xf32>,
    return
  }
  func.func @transform_0(%arg0: i32) -> (i32, i32) {
    %c0_i32 = arith.constant 0 : i32
    %c0_i32_0 = arith.constant 0 : i32
    return %arg0, %c0_i32 : i32, i32
  }
  func.func @transform_1(%arg0: i32) -> (i32, i32) {
    %c0_i32 = arith.constant 0 : i32
    %c0_i32_0 = arith.constant 0 : i32
    %c0_i32_1 = arith.constant 0 : i32
    return %c0_i32, %c0_i32_0 : i32, i32
  }
  func.func @transform_2(%arg0: i32) -> (i32, i32) {
    %c0_i32 = arith.constant 0 : i32
    %c0_i32_0 = arith.constant 0 : i32
    %c0_i32_1 = arith.constant 0 : i32
    return %c0_i32, %c0_i32_0 : i32, i32
  }
  func.func @transform_3(%arg0: i32) -> (i32, i32) {
    %c0_i32 = arith.constant 0 : i32
    %c0_i32_0 = arith.constant 0 : i32
    return %arg0, %c0_i32 : i32, i32
  }
}

</mosaic_0001>

<bundles_post_ra>
// kernel: tpu_custom_call.1
= control target key start
LH: loop header
LB: loop body
LE: loop exit
PB: predicated region body
PF: predicated region fallthrough
CT: control target
= control target key end

     0   :  { %v161_v1 = vmov 0.0   ;;  %vm162_vm0 = vmmov 0   ;;  %s205_s0 = inlined_call_operand.vmem [shape: f32[8,32], index: 0, kind: input, shape index: {}]   ;;  %s206_s1 = inlined_call_operand.vmem [shape: f32[32,16], index: 1, kind: input, shape index: {}]   ;;  %s207_s2 = inlined_call_operand.vmem [shape: f32[1,16], index: 2, kind: input, shape index: {}]   ;;  %s208_s3 = inlined_call_operand.hbm [shape: f32[8,16], index: 3, kind: output, shape index: {}]  }
   0x1   :  { %v19_v0 = vld [vmem:[%s206_s1 + $0x18] sm:$0xff]  ;;  %125 = vmatprep.subr.mxu0 %v161_v1  ;;  %v18_v2 = vld [vmem:[%s206_s1 + $0x10] sm:$0xff]  ;;  %133 = vmatprep.mubr.msk.f32.mxu0 %vm162_vm0, %v161_v1 }
   0x2   :  { %126 = vmatpush3.msra.mxu0 %v19_v0 }
   0x3   :  { %8 = vsyncpa [#allocation3], 0  ;;  %127 = vmatprep.subr.mxu0 %v161_v1  ;;  %v17_v3 = vld [vmem:[%s206_s1 + $0x8] sm:$0xff]  ;;  %v16_v4 = vld [vmem:[%s206_s1] sm:$0xff]  ;;  %vm27_vm1 = vcmask 261120   ;;  %s163_s24 = smov [#allocation2]  }
   0x4   :  { %128 = vmatpush3.msra.mxu0 %v18_v2  ;;  %v15_v5 = vld [vmem:[%s205_s0] sm:$0xff]  ;;  %s110_s25 = sshll.u32 %s163_s24, 4  ;;  %vm102_vm2 = vcmask 130048   ;;  %s111_s25 = int_to_ptr.vmem [resolvable:$true] %s110_s25 }
   0x5   :  { %129 = vmatprep.subr.mxu0 %v161_v1  ;;  %v118_v6 = vld [vmem:[%s207_s2] ss:$0 sm:$0xff]  ;;  %s139_s1 = scalar_lea.vmem %s111_s25, 128  ;;  %p144_p1 = scmp.lt.s32.totalorder %s111_s25, %s111_s25 }
   0x6   :  { %130 = vmatpush3.msra.mxu0 %v17_v3  ;;  %p140_p0 = scmp.ne.s32.totalorder %s111_s25, %s139_s1  ;;  %p145_p2 = scmp.lt.s32.totalorder %s139_s1, %s139_s1 }
   0x7   :  { %131 = vmatprep.subr.mxu0 %v161_v1 }
   0x8   :  { %132 = vmatpush3.msra.mxu0 %v16_v4  ;;  %p146_p3 = por %p145_p2, %p144_p1 }
   0x9   :  { %134 = vmatmul.mubr.msk.f32.vlgmr.msra.gmra.mxu0 %vm27_vm1, %v15_v5 }
   0xa   :  { %p147_p4 = pnand %p146_p3, %p140_p0 }
  0xc9   :  { %v97_v7 = vpop.f32.mrf.mxu0 }
  0xca   :  { %v98_v8 = vadd.f32 %v118_v6, %v97_v7 }
  0xcb   :  { %v135_v9 = vpop.f32.mrf.mxu0 }
  0xcc   :  { %v101_v10 = vmax.f32 %v98_v8, 0.0 }
  0xce   :  { %103 = vst.msk [vmem:[#allocation2] sm:$0xff] %vm102_vm2, %v101_v10 }
  0xcf   :  { %150 = shalt.err (!%p147_p4)
}
  0xd0   :  { %113 = dma.vmem_to_hbm [thread:$0]  %s111_s25, 128, %s208_s3, [#allocation3]  }
  0xd1   :  { %159 = dma.done.wait [#allocation3], 128  }
  0xd2   :  { %160 = vsyncadd [#allocation3], 4294967168 }
  0xd3   :  { %117 = vsyncpa [#allocation3], 1 }

</bundles_post_ra>
